<compile_context>
chip_gen: v7x
topology: tpu7x:2x2x1
jax: 0.10.0
libtpu: 0.0.40
codegen_flags: <defaults>
</compile_context>

<pallas_src>
import jax
import jax.numpy as jnp
from jax.experimental import pallas as pl
from jax.experimental.pallas import tpu as pltpu

EPS = 1e-5


# ---------------------------------------------------------------------------
# helpers
# ---------------------------------------------------------------------------
def _tile_m(m, target=512):
    """Row-tile size: as large as fits comfortably, divisible by 8 (sublanes)."""
    if m <= target:
        return m
    for t in (target, 256, 128, 64, 32, 16, 8):
        if m % t == 0:
            return t
    return m


def _im2col(x, ksize, stride, pad):
    """x: (N,H,W,C) -> patches (N*Ho*Wo, ksize*ksize*C), plus (Ho, Wo).

    Pure data-movement done in the XLA wrapper (layout plumbing); the compute
    (matmul + stats + BN + relu + residual) all happens inside Pallas kernels.
    Patch channel ordering is (kh, kw, cin), matching an HWIO weight reshape.
    """
    n, h, w, c = x.shape
    if pad:
        x = jnp.pad(x, ((0, 0), (pad, pad), (pad, pad), (0, 0)))
    ho = (h + 2 * pad - ksize) // stride + 1
    wo = (w + 2 * pad - ksize) // stride + 1
    cols = []
    for kh in range(ksize):
        for kw in range(ksize):
            cols.append(x[:, kh:kh + (ho - 1) * stride + 1:stride,
                        kw:kw + (wo - 1) * stride + 1:stride, :])
    p = jnp.concatenate(cols, axis=-1) if len(cols) > 1 else cols[0]
    return p.reshape(n * ho * wo, ksize * ksize * c), ho, wo


def _scale_shift(sum_v, ssq_v, g_v, b_v, inv_n):
    """Fold BN params + batch stats into one (1,C) scale/shift pair."""
    mean = sum_v * inv_n
    var = jnp.maximum(ssq_v * inv_n - mean * mean, 0.0)   # biased variance
    scale = g_v * jax.lax.rsqrt(var + EPS)                # rsqrt -> EUP slot
    shift = b_v - mean * scale
    return scale, shift


# ---------------------------------------------------------------------------
# Kernel 1: conv-as-matmul + per-channel sum / sum-of-squares (BN statistics)
# ---------------------------------------------------------------------------
def _conv_stats_kernel(p_ref, w_ref, y_ref, sum_ref, ssq_ref):
    y = jnp.dot(p_ref[...], w_ref[...], preferred_element_type=jnp.float32)
    y_ref[...] = y.astype(y_ref.dtype)

    @pl.when(pl.program_id(0) == 0)
    def _():
        sum_ref[...] = jnp.zeros_like(sum_ref)
        ssq_ref[...] = jnp.zeros_like(ssq_ref)

    # Cross-sublane reduction once per row-tile; accumulation across tiles is
    # a plain VPU add into the resident (1, C) blocks.
    sum_ref[...] += jnp.sum(y, axis=0, keepdims=True)
    ssq_ref[...] += jnp.sum(y * y, axis=0, keepdims=True)


def conv_stats(patches, w):
    m, k = patches.shape
    _, c = w.shape
    tm = _tile_m(m)
    row_in = pl.BlockSpec((tm, k), lambda i: (i, 0))
    w_spec = pl.BlockSpec((k, c), lambda i: (0, 0))     # weight resident in VMEM
    stat = pl.BlockSpec((1, c), lambda i: (0, 0))       # revisited accumulator
    return pl.pallas_call(
        _conv_stats_kernel,
        out_shape=(jax.ShapeDtypeStruct((m, c), jnp.float32),
                   jax.ShapeDtypeStruct((1, c), jnp.float32),
                   jax.ShapeDtypeStruct((1, c), jnp.float32)),
        grid=(m // tm,),
        in_specs=[row_in, w_spec],
        out_specs=(pl.BlockSpec((tm, c), lambda i: (i, 0)), stat, stat),
        compiler_params=pltpu.CompilerParams(
            dimension_semantics=("arbitrary",)),
    )(patches, w)


# ---------------------------------------------------------------------------
# Kernel 2: BN (folded scale/shift) [+ ReLU]
# ---------------------------------------------------------------------------
def _make_bn_apply_kernel(inv_n, relu):
    def kernel(y_ref, sum_ref, ssq_ref, g_ref, b_ref, o_ref):
        scale, shift = _scale_shift(sum_ref[...], ssq_ref[...],
                                    g_ref[...], b_ref[...], inv_n)
        z = y_ref[...] * scale + shift            # 2 VPU ops / element
        if relu:
            z = jnp.maximum(z, 0.0)
        o_ref[...] = z.astype(o_ref.dtype)
    return kernel


def bn_apply(y, s, q, gamma, beta, *, count, relu):
    m, c = y.shape
    tm = _tile_m(m)
    row = pl.BlockSpec((tm, c), lambda i: (i, 0))
    stat = pl.BlockSpec((1, c), lambda i: (0, 0))
    return pl.pallas_call(
        _make_bn_apply_kernel(1.0 / count, relu),
        out_shape=jax.ShapeDtypeStruct((m, c), y.dtype),
        grid=(m // tm,),
        in_specs=[row, stat, stat, stat, stat],
        out_specs=row,
        compiler_params=pltpu.CompilerParams(
            dimension_semantics=("parallel",)),
    )(y, s, q, gamma, beta)


# ---------------------------------------------------------------------------
# Kernel 3: bn2 + shortcut-BN + residual add + ReLU (+ preact), fully fused
# ---------------------------------------------------------------------------
def _make_final_kernel(inv_n, shortcut_has_bn):
    def kernel(y2_ref, s2_ref, q2_ref, g2_ref, b2_ref, sc_ref, *rest):
        if shortcut_has_bn:
            ss_ref, qs_ref, gs_ref, bs_ref, out_ref, pre_ref = rest
        else:
            out_ref, pre_ref = rest
        sc2, sh2 = _scale_shift(s2_ref[...], q2_ref[...],
                                g2_ref[...], b2_ref[...], inv_n)
        z = y2_ref[...] * sc2 + sh2
        if shortcut_has_bn:
            scs, shs = _scale_shift(ss_ref[...], qs_ref[...],
                                    gs_ref[...], bs_ref[...], inv_n)
            z = z + (sc_ref[...] * scs + shs)
        else:
            z = z + sc_ref[...]
        pre_ref[...] = z.astype(pre_ref.dtype)
        out_ref[...] = jnp.maximum(z, 0.0).astype(out_ref.dtype)
    return kernel


def bn_add_relu(y2, s2, q2, g2, b2, shortcut, sc_stats, *, count):
    m, c = y2.shape
    tm = _tile_m(m)
    row = pl.BlockSpec((tm, c), lambda i: (i, 0))
    stat = pl.BlockSpec((1, c), lambda i: (0, 0))
    has_bn = sc_stats is not None
    in_specs = [row, stat, stat, stat, stat, row]
    args = [y2, s2, q2, g2, b2, shortcut]
    if has_bn:
        in_specs += [stat, stat, stat, stat]
        args += list(sc_stats)
    return pl.pallas_call(
        _make_final_kernel(1.0 / count, has_bn),
        out_shape=(jax.ShapeDtypeStruct((m, c), y2.dtype),
                   jax.ShapeDtypeStruct((m, c), y2.dtype)),
        grid=(m // tm,),
        in_specs=in_specs,
        out_specs=(row, row),
        compiler_params=pltpu.CompilerParams(
            dimension_semantics=("parallel",)),
    )(*args)


# ---------------------------------------------------------------------------
# BasicBlock forward (channels-last / NHWC layout for TPU lane density)
# ---------------------------------------------------------------------------
def basic_block_forward(x, params, *, stride=1, is_last=False):
    n, h, w, cin = x.shape
    planes = params["w1"].shape[-1]
    has_shortcut = (stride != 1) or (cin != planes)

    # conv1 (+ BN1 stats) -> BN1 + ReLU
    p1, ho, wo = _im2col(x, 3, stride, 1)
    m = n * ho * wo
    y1, s1, q1 = conv_stats(p1, params["w1"].reshape(9 * cin, planes))
    h1 = bn_apply(y1, s1, q1, params["g1"], params["b1"], count=m, relu=True)

    # conv2 (+ BN2 stats)
    p2, _, _ = _im2col(h1.reshape(n, ho, wo, planes), 3, 1, 1)
    y2, s2, q2 = conv_stats(p2, params["w2"].reshape(9 * planes, planes))

    # shortcut path, then fused bn2 + shortcut-BN + add + relu (+ preact)
    if has_shortcut:
        psc, _, _ = _im2col(x, 1, stride, 0)
        ysc, ssc, qsc = conv_stats(psc, params["wsc"].reshape(cin, planes))
        out, pre = bn_add_relu(y2, s2, q2, params["g2"], params["b2"],
                               ysc, (ssc, qsc, params["gsc"], params["bsc"]),
                               count=m)
    else:
        out, pre = bn_add_relu(y2, s2, q2, params["g2"], params["b2"],
                               x.reshape(m, planes), None, count=m)

    out = out.reshape(n, ho, wo, planes)
    pre = pre.reshape(n, ho, wo, planes)
    return (out, pre) if is_last else out


# ---------------------------------------------------------------------------
# Pure-JAX reference (same training-mode BN semantics) and demo
# ---------------------------------------------------------------------------
def _basic_block_ref(x, params, *, stride):
    def conv(v, wgt, s, pad):
        return jax.lax.conv_general_dilated(
            v, wgt, (s, s), [(pad, pad), (pad, pad)],
            dimension_numbers=("NHWC", "HWIO", "NHWC"))

    def bn(y, g, b):
        mean = jnp.mean(y, axis=(0, 1, 2), keepdims=True)
        var = jnp.mean((y - mean) ** 2, axis=(0, 1, 2), keepdims=True)
        return ((y - mean) * jax.lax.rsqrt(var + EPS) * g.reshape(1, 1, 1, -1)
                + b.reshape(1, 1, 1, -1))

    cin = x.shape[-1]
    planes = params["w1"].shape[-1]
    h1 = jax.nn.relu(bn(conv(x, params["w1"], stride, 1),
                        params["g1"], params["b1"]))
    out = bn(conv(h1, params["w2"], 1, 1), params["g2"], params["b2"])
    if stride != 1 or cin != planes:
        sc = bn(conv(x, params["wsc"], stride, 0), params["gsc"], params["bsc"])
    else:
        sc = x
    pre = out + sc
    return jax.nn.relu(pre), pre


def _init_params(key, cin, planes, has_shortcut):
    ks = jax.random.split(key, 9)
    p = {
        "w1": 0.1 * jax.random.normal(ks[0], (3, 3, cin, planes), jnp.float32),
        "g1": 1.0 + 0.1 * jax.random.normal(ks[1], (1, planes), jnp.float32),
        "b1": 0.1 * jax.random.normal(ks[2], (1, planes), jnp.float32),
        "w2": 0.1 * jax.random.normal(ks[3], (3, 3, planes, planes), jnp.float32),
        "g2": 1.0 + 0.1 * jax.random.normal(ks[4], (1, planes), jnp.float32),
        "b2": 0.1 * jax.random.normal(ks[5], (1, planes), jnp.float32),
    }
    if has_shortcut:
        p["wsc"] = 0.1 * jax.random.normal(ks[6], (1, 1, cin, planes), jnp.float32)
        p["gsc"] = 1.0 + 0.1 * jax.random.normal(ks[7], (1, planes), jnp.float32)
        p["bsc"] = 0.1 * jax.random.normal(ks[8], (1, planes), jnp.float32)
    return p


if __name__ == "__main__":
    key = jax.random.PRNGKey(0)
    kx1, kp1, kx2, kp2 = jax.random.split(key, 4)

    # Config A: projection shortcut (stride=2, in_planes != planes), is_last=True.
    n, h, w, cin, planes, stride = 2, 16, 16, 16, 32, 2
    x = jax.random.normal(kx1, (n, h, w, cin), jnp.float32)
    params = _init_params(kp1, cin, planes, True)
    out, pre = basic_block_forward(x, params, stride=stride, is_last=True)
    out, pre = jax.block_until_ready((out, pre))
    ref_out, ref_pre = _basic_block_ref(x, params, stride=stride)
    assert jnp.allclose(out, ref_out, atol=1e-3, rtol=1e-3), "config A out mismatch"
    assert jnp.allclose(pre, ref_pre, atol=1e-3, rtol=1e-3), "config A preact mismatch"

    # Config B: identity shortcut (stride=1, in_planes == planes), is_last=False.
    n, h, w, cin, planes, stride = 2, 8, 8, 32, 32, 1
    x = jax.random.normal(kx2, (n, h, w, cin), jnp.float32)
    params = _init_params(kp2, cin, planes, False)
    out = basic_block_forward(x, params, stride=stride, is_last=False)
    out = jax.block_until_ready(out)
    ref_out, _ = _basic_block_ref(x, params, stride=stride)
    assert jnp.allclose(out, ref_out, atol=1e-3, rtol=1e-3), "config B out mismatch"

    print("KERNEL_OK")
</pallas_src>

<mosaic_0001>
module attributes {stable_mosaic.version = 11 : i64} {
  func.func @_conv_stats_kernel(%arg0: i32, %arg1: memref<128x144xf32, #tpu.memory_space<vmem>>, %arg2: memref<144x32xf32, #tpu.memory_space<vmem>>, %arg3: memref<128x32xf32, #tpu.memory_space<vmem>>, %arg4: memref<1x32xf32, #tpu.memory_space<vmem>>, %arg5: memref<1x32xf32, #tpu.memory_space<vmem>>) attributes {dimension_semantics = [#tpu.dimension_semantics<arbitrary>], iteration_bounds = array<i64: 1>, scalar_prefetch = 0 : i64, scratch_operands = 0 : i64, tpu.core_type = #tpu.core_type<tc>, window_params = [{transform_indices = @transform_0, window_bounds = array<i64: 128, 144>}, {pipeline_mode = #tpu.pipeline_mode<synchronous>, transform_indices = @transform_1, window_bounds = array<i64: 144, 32>}, {transform_indices = @transform_2, window_bounds = array<i64: 128, 32>}, {pipeline_mode = #tpu.pipeline_mode<synchronous>, transform_indices = @transform_3, window_bounds = array<i64: 1, 32>}, {pipeline_mode = #tpu.pipeline_mode<synchronous>, transform_indices = @transform_4, window_bounds = array<i64: 1, 32>}]} {
    %c0 = arith.constant 0 : index
    %c0_0 = arith.constant 0 : index
    %0 = vector.load %arg1[%c0, %c0_0] : memref<128x144xf32, #tpu.memory_space<vmem>>, vector<128x144xf32>
    %c0_1 = arith.constant 0 : index
    %c0_2 = arith.constant 0 : index
    %1 = vector.load %arg2[%c0_1, %c0_2] : memref<144x32xf32, #tpu.memory_space<vmem>>, vector<144x32xf32>
    %cst = arith.constant dense<0.000000e+00> : vector<128x32xf32>
    %2 = tpu.matmul %0, %1, %cst {dimension_numbers = #tpu.dot_dimension_numbers<[1], [0], [0], [1], [0, 0, 1, 1], [], []>} : vector<128x144xf32>, vector<144x32xf32>, vector<128x32xf32> -> vector<128x32xf32>
    %c0_3 = arith.constant 0 : index
    %c0_4 = arith.constant 0 : index
    %3 = vector.load %arg3[%c0_3, %c0_4] : memref<128x32xf32, #tpu.memory_space<vmem>>, vector<128x32xf32>
    tpu.vector_store %arg3[%c0_3, %c0_4], %2 {strides = array<i32>} : memref<128x32xf32, #tpu.memory_space<vmem>>, vector<128x32xf32>,
    %c0_i32 = arith.constant 0 : i32
    %4 = arith.cmpi eq, %arg0, %c0_i32 : i32
    %5 = arith.extui %4 : i1 to i32
    %c0_i32_5 = arith.constant 0 : i32
    %6 = arith.cmpi ne, %5, %c0_i32_5 : i32
    scf.if %6 {
      %cst_16 = arith.constant 0.000000e+00 : f32
      %18 = vector.broadcast %cst_16 : f32 to vector<1x32xf32>
      %c0_17 = arith.constant 0 : index
      %c0_18 = arith.constant 0 : index
      %19 = vector.load %arg4[%c0_17, %c0_18] : memref<1x32xf32, #tpu.memory_space<vmem>>, vector<1x32xf32>
      tpu.vector_store %arg4[%c0_17, %c0_18], %18 {strides = array<i32>} : memref<1x32xf32, #tpu.memory_space<vmem>>, vector<1x32xf32>,
      %cst_19 = arith.constant 0.000000e+00 : f32
      %20 = vector.broadcast %cst_19 : f32 to vector<1x32xf32>
      %c0_20 = arith.constant 0 : index
      %c0_21 = arith.constant 0 : index
      %21 = vector.load %arg5[%c0_20, %c0_21] : memref<1x32xf32, #tpu.memory_space<vmem>>, vector<1x32xf32>
      tpu.vector_store %arg5[%c0_20, %c0_21], %20 {strides = array<i32>} : memref<1x32xf32, #tpu.memory_space<vmem>>, vector<1x32xf32>,
    } else {
    }
    %c0_6 = arith.constant 0 : index
    %c0_7 = arith.constant 0 : index
    %7 = vector.load %arg4[%c0_6, %c0_7] : memref<1x32xf32, #tpu.memory_space<vmem>>, vector<1x32xf32>
    %cst_8 = arith.constant dense<0.000000e+00> : vector<32xf32>
    %8 = vector.multi_reduction <add>, %2, %cst_8 [0] : vector<128x32xf32> to vector<32xf32>
    %9 = vector.shape_cast %8 : vector<32xf32> to vector<1x32xf32>
    %10 = arith.addf %7, %9 : vector<1x32xf32>
    %c0_9 = arith.constant 0 : index
    %c0_10 = arith.constant 0 : index
    %11 = vector.load %arg4[%c0_9, %c0_10] : memref<1x32xf32, #tpu.memory_space<vmem>>, vector<1x32xf32>
    tpu.vector_store %arg4[%c0_9, %c0_10], %10 {strides = array<i32>} : memref<1x32xf32, #tpu.memory_space<vmem>>, vector<1x32xf32>,
    %c0_11 = arith.constant 0 : index
    %c0_12 = arith.constant 0 : index
    %12 = vector.load %arg5[%c0_11, %c0_12] : memref<1x32xf32, #tpu.memory_space<vmem>>, vector<1x32xf32>
    %13 = arith.mulf %2, %2 : vector<128x32xf32>
    %cst_13 = arith.constant dense<0.000000e+00> : vector<32xf32>
    %14 = vector.multi_reduction <add>, %13, %cst_13 [0] : vector<128x32xf32> to vector<32xf32>
    %15 = vector.shape_cast %14 : vector<32xf32> to vector<1x32xf32>
    %16 = arith.addf %12, %15 : vector<1x32xf32>
    %c0_14 = arith.constant 0 : index
    %c0_15 = arith.constant 0 : index
    %17 = vector.load %arg5[%c0_14, %c0_15] : memref<1x32xf32, #tpu.memory_space<vmem>>, vector<1x32xf32>
    tpu.vector_store %arg5[%c0_14, %c0_15], %16 {strides = array<i32>} : memref<1x32xf32, #tpu.memory_space<vmem>>, vector<1x32xf32>,
    return
  }
  func.func @transform_0(%arg0: i32) -> (i32, i32) {
    %c0_i32 = arith.constant 0 : i32
    %c0_i32_0 = arith.constant 0 : i32
    return %arg0, %c0_i32 : i32, i32
  }
  func.func @transform_1(%arg0: i32) -> (i32, i32) {
    %c0_i32 = arith.constant 0 : i32
    %c0_i32_0 = arith.constant 0 : i32
    %c0_i32_1 = arith.constant 0 : i32
    return %c0_i32, %c0_i32_0 : i32, i32
  }
  func.func @transform_2(%arg0: i32) -> (i32, i32) {
    %c0_i32 = arith.constant 0 : i32
    %c0_i32_0 = arith.constant 0 : i32
    return %arg0, %c0_i32 : i32, i32
  }
  func.func @transform_3(%arg0: i32) -> (i32, i32) {
    %c0_i32 = arith.constant 0 : i32
    %c0_i32_0 = arith.constant 0 : i32
    %c0_i32_1 = arith.constant 0 : i32
    return %c0_i32, %c0_i32_0 : i32, i32
  }
  func.func @transform_4(%arg0: i32) -> (i32, i32) {
    %c0_i32 = arith.constant 0 : i32
    %c0_i32_0 = arith.constant 0 : i32
    %c0_i32_1 = arith.constant 0 : i32
    return %c0_i32, %c0_i32_0 : i32, i32
  }
}

</mosaic_0001>

<bundles_post_ra>
// kernel: tpu_custom_call.1
= control target key start
LH: loop header
LB: loop body
LE: loop exit
PB: predicated region body
PF: predicated region fallthrough
CT: control target
= control target key end

     0   :  { %10 = vsyncpa [#allocation3], 0  ;;  %v526_v3 = vmov 0.0|0.0   ;;  %vm66_vm0 = vcmask 130048   ;;  %s901_s0 = inlined_call_operand.vmem [shape: f32[128,144], index: 0, kind: input, shape index: {}]   ;;  %s902_s1 = inlined_call_operand.vmem [shape: f32[144,32], index: 1, kind: input, shape index: {}]   ;;  %s903_s2 = inlined_call_operand.vmem [shape: f32[128,32], index: 2, kind: output, shape index: {0}]   ;;  %s904_s3 = inlined_call_operand.hbm [shape: f32[1,32], index: 3, kind: output, shape index: {1}]   ;;  %s905_s4 = inlined_call_operand.hbm [shape: f32[1,32], index: 4, kind: output, shape index: {2}]  }
   0x1   :  { %v48_v0 = vld [vmem:[%s902_s1] sm:$0xff]  ;;  %v49_v1 = vld [vmem:[%s902_s1 + $0x8] sm:$0xff]  ;;  %v50_v2 = vld [vmem:[%s902_s1 + $0x10] sm:$0xff]  ;;  %429 = vmatprep.subr.bf16.mxu0 %v526_v3  ;;  %456 = vmatprep.subr.bf16.mxu1 %v526_v3 }
   0x2   :  { %v430_v4 = vpack.c.bf16 %v49_v1, %v48_v0  ;;  %v51_v5 = vld [vmem:[%s902_s1 + $0x18] sm:$0xff]  ;;  %v52_v7 = vld [vmem:[%s902_s1 + $0x20] sm:$0xff]  ;;  %v53_v8 = vld [vmem:[%s902_s1 + $0x28] sm:$0xff] }
   0x3   :  { %v433_v6 = vpack.c.bf16 %v51_v5, %v50_v2  ;;  %v17_v9 = vld [vmem:[%s901_s0 + $0x8] sm:$0xff]  ;;  %v436_v10 = vpack.c.bf16 %v53_v8, %v52_v7  ;;  %v54_v11 = vld [vmem:[%s902_s1 + $0x30] sm:$0xff]  ;;  %v55_v12 = vld [vmem:[%s902_s1 + $0x38] sm:$0xff] }
   0x4   :  { %431 = vmatpush1.bf16.msra.mxu0 %v430_v4  ;;  %465 = vmatpush1.bf16.msra.mxu1 %v430_v4  ;;  %v33_v13 = vld [vmem:[%s901_s0 + $0x88] sm:$0xff]  ;;  %v439_v14 = vpack.c.bf16 %v55_v12, %v54_v11  ;;  %v56_v15 = vld [vmem:[%s902_s1 + $0x40] sm:$0xff]  ;;  %v58_v18 = vld [vmem:[%s902_s1 + $0x50] sm:$0xff] }
   0x5   :  { %432 = vmatprep.subr.bf16.mxu0 %v526_v3  ;;  %457 = vmatprep.subr.bf16.mxu1 %v526_v3  ;;  %v57_v16 = vld [vmem:[%s902_s1 + $0x48] sm:$0xff]  ;;  %v59_v19 = vld [vmem:[%s902_s1 + $0x58] sm:$0xff] }
   0x6   :  { %413 = vmatprep.mubr.msk.f32.mxu0 %vm66_vm0, %v17_v9  ;;  %421 = vmatprep.mubr.msk.f32.mxu1 %vm66_vm0, %v33_v13  ;;  %v442_v17 = vpack.c.bf16 %v57_v16, %v56_v15 }
   0x8   :  { %434 = vmatpush1.bf16.msra.mxu0 %v433_v6  ;;  %466 = vmatpush1.bf16.msra.mxu1 %v433_v6 }
   0x9   :  { %435 = vmatprep.subr.bf16.mxu0 %v526_v3  ;;  %458 = vmatprep.subr.bf16.mxu1 %v526_v3 }
   0xc   :  { %437 = vmatpush1.bf16.msra.mxu0 %v436_v10  ;;  %467 = vmatpush1.bf16.msra.mxu1 %v436_v10 }
   0xd   :  { %438 = vmatprep.subr.bf16.mxu0 %v526_v3  ;;  %459 = vmatprep.subr.bf16.mxu1 %v526_v3 }
  0x10   :  { %440 = vmatpush1.bf16.msra.mxu0 %v439_v14  ;;  %468 = vmatpush1.bf16.msra.mxu1 %v439_v14 }
  0x11   :  { %441 = vmatprep.subr.bf16.mxu0 %v526_v3  ;;  %460 = vmatprep.subr.bf16.mxu1 %v526_v3 }
  0x12   :  { %11 = vsyncpa [#allocation5], 0  ;;  %v445_v20 = vpack.c.bf16 %v59_v19, %v58_v18  ;;  %v60_v21 = vld [vmem:[%s902_s1 + $0x60] sm:$0xff]  ;;  %v61_v22 = vld [vmem:[%s902_s1 + $0x68] sm:$0xff]  ;;  %vm281_vm1 = vcmask 253952   ;;  %v527_v60 = vmov 0.0  }
  0x13   :  { %v448_v23 = vpack.c.bf16 %v61_v22, %v60_v21  ;;  %v62_v24 = vld [vmem:[%s902_s1 + $0x70] sm:$0xff]  ;;  %v63_v25 = vld [vmem:[%s902_s1 + $0x78] sm:$0xff]  ;;  %v64_v27 = vld [vmem:[%s902_s1 + $0x80] sm:$0xff]  ;;  %282 = vst.msk [vmem:[#allocation2] sm:$0x1] %vm281_vm1, %v527_v60  ;;  %vm260_vm2 = vcmask 261120  }
  0x14   :  { %443 = vmatpush1.bf16.msra.mxu0 %v442_v17  ;;  %469 = vmatpush1.bf16.msra.mxu1 %v442_v17  ;;  %v451_v26 = vpack.c.bf16 %v63_v25, %v62_v24  ;;  %v65_v28 = vld [vmem:[%s902_s1 + $0x88] sm:$0xff]  ;;  %v16_v30 = vld [vmem:[%s901_s0] sm:$0xff]  ;;  %v19_v32 = vld [vmem:[%s901_s0 + $0x18] sm:$0xff]  ;;  %283 = vst.msk [vmem:[#allocation4] sm:$0x1] %vm281_vm1, %v527_v60  ;;  %s529_s12 = smov [#allocation4]  }
  0x15   :  { %444 = vmatprep.subr.bf16.mxu0 %v526_v3  ;;  %461 = vmatprep.subr.bf16.mxu1 %v526_v3  ;;  %v454_v29 = vpack.c.bf16 %v65_v28, %v64_v27  ;;  %v32_v31 = vld [vmem:[%s901_s0 + $0x80] sm:$0xff]  ;;  %v35_v33 = vld [vmem:[%s901_s0 + $0x98] sm:$0xff]  ;;  %v18_v34 = vld [vmem:[%s901_s0 + $0x10] sm:$0xff]  ;;  %s399_s13 = sshll.u32 %s529_s12, 4  ;;  %s868_s13 = int_to_ptr.vmem [resolvable:$true] %s399_s13 }
  0x16   :  { %v34_v35 = vld [vmem:[%s901_s0 + $0x90] sm:$0xff]  ;;  %v21_v36 = vld [vmem:[%s901_s0 + $0x28] sm:$0xff]  ;;  %v20_v38 = vld [vmem:[%s901_s0 + $0x20] sm:$0xff] }
  0x17   :  { %v37_v37 = vld [vmem:[%s901_s0 + $0xa8] sm:$0xff]  ;;  %v36_v39 = vld [vmem:[%s901_s0 + $0xa0] sm:$0xff]  ;;  %v23_v40 = vld [vmem:[%s901_s0 + $0x38] sm:$0xff] }
  0x18   :  { %446 = vmatpush1.bf16.msra.mxu0 %v445_v20  ;;  %470 = vmatpush1.bf16.msra.mxu1 %v445_v20  ;;  %v39_v41 = vld [vmem:[%s901_s0 + $0xb8] sm:$0xff]  ;;  %v22_v42 = vld [vmem:[%s901_s0 + $0x30] sm:$0xff]  ;;  %v25_v44 = vld [vmem:[%s901_s0 + $0x48] sm:$0xff] }
  0x19   :  { %447 = vmatprep.subr.bf16.mxu0 %v526_v3  ;;  %462 = vmatprep.subr.bf16.mxu1 %v526_v3  ;;  %v38_v43 = vld [vmem:[%s901_s0 + $0xb0] sm:$0xff]  ;;  %v41_v45 = vld [vmem:[%s901_s0 + $0xc8] sm:$0xff]  ;;  %v24_v46 = vld [vmem:[%s901_s0 + $0x40] sm:$0xff] }
  0x1a   :  { %v40_v47 = vld [vmem:[%s901_s0 + $0xc0] sm:$0xff]  ;;  %v27_v48 = vld [vmem:[%s901_s0 + $0x58] sm:$0xff]  ;;  %v26_v50 = vld [vmem:[%s901_s0 + $0x50] sm:$0xff] }
  0x1b   :  { %v43_v49 = vld [vmem:[%s901_s0 + $0xd8] sm:$0xff]  ;;  %v42_v51 = vld [vmem:[%s901_s0 + $0xd0] sm:$0xff]  ;;  %v29_v52 = vld [vmem:[%s901_s0 + $0x68] sm:$0xff] }
  0x1c   :  { %449 = vmatpush1.bf16.msra.mxu0 %v448_v23  ;;  %471 = vmatpush1.bf16.msra.mxu1 %v448_v23  ;;  %v45_v53 = vld [vmem:[%s901_s0 + $0xe8] sm:$0xff]  ;;  %v28_v54 = vld [vmem:[%s901_s0 + $0x60] sm:$0xff]  ;;  %v31_v56 = vld [vmem:[%s901_s0 + $0x78] sm:$0xff] }
  0x1d   :  { %450 = vmatprep.subr.bf16.mxu0 %v526_v3  ;;  %463 = vmatprep.subr.bf16.mxu1 %v526_v3  ;;  %v44_v55 = vld [vmem:[%s901_s0 + $0xe0] sm:$0xff]  ;;  %v47_v57 = vld [vmem:[%s901_s0 + $0xf8] sm:$0xff]  ;;  %v30_v58 = vld [vmem:[%s901_s0 + $0x70] sm:$0xff] }
  0x1e   :  { %v46_v59 = vld [vmem:[%s901_s0 + $0xf0] sm:$0xff] }
  0x20   :  { %452 = vmatpush1.bf16.msra.mxu0 %v451_v26  ;;  %472 = vmatpush1.bf16.msra.mxu1 %v451_v26 }
  0x21   :  { %453 = vmatprep.subr.bf16.mxu0 %v526_v3  ;;  %464 = vmatprep.subr.bf16.mxu1 %v526_v3 }
  0x24   :  { %455 = vmatpush1.bf16.msra.mxu0 %v454_v29  ;;  %473 = vmatpush1.bf16.msra.mxu1 %v454_v29 }
  0x27   :  { %180 = vmatmul.mubr.f32.vlgmr.msra.gmra.mrb[0].mxu0 %v16_v30  ;;  %220 = vmatmul.mubr.f32.vlgmr.msra.gmra.mrb[0].mxu1 %v32_v31 }
  0x28   :  { %414 = vmatprep.mubr.msk.f32.mxu0 %vm66_vm0, %v19_v32  ;;  %422 = vmatprep.mubr.msk.f32.mxu1 %vm66_vm0, %v35_v33 }
  0x2b   :  { %185 = vmatmul.mubr.f32.gmra.mrb[2].mxu0 %v18_v34  ;;  %225 = vmatmul.mubr.f32.gmra.mrb[2].mxu1 %v34_v35 }
  0x2c   :  { %415 = vmatprep.mubr.msk.f32.mxu0 %vm66_vm0, %v21_v36  ;;  %423 = vmatprep.mubr.msk.f32.mxu1 %vm66_vm0, %v37_v37 }
  0x2f   :  { %190 = vmatmul.mubr.f32.gmra.mrb[4].mxu0 %v20_v38  ;;  %230 = vmatmul.mubr.f32.gmra.mrb[4].mxu1 %v36_v39 }
  0x30   :  { %416 = vmatprep.mubr.msk.f32.mxu0 %vm66_vm0, %v23_v40  ;;  %424 = vmatprep.mubr.msk.f32.mxu1 %vm66_vm0, %v39_v41 }
  0x33   :  { %195 = vmatmul.mubr.f32.gmra.mrb[6].mxu0 %v22_v42  ;;  %235 = vmatmul.mubr.f32.gmra.mrb[6].mxu1 %v38_v43 }
  0x34   :  { %417 = vmatprep.mubr.msk.f32.mxu0 %vm66_vm0, %v25_v44  ;;  %425 = vmatprep.mubr.msk.f32.mxu1 %vm66_vm0, %v41_v45 }
  0x37   :  { %200 = vmatmul.mubr.f32.gmra.mrb[8].mxu0 %v24_v46  ;;  %240 = vmatmul.mubr.f32.gmra.mrb[8].mxu1 %v40_v47 }
  0x38   :  { %418 = vmatprep.mubr.msk.f32.mxu0 %vm66_vm0, %v27_v48  ;;  %426 = vmatprep.mubr.msk.f32.mxu1 %vm66_vm0, %v43_v49 }
  0x3b   :  { %205 = vmatmul.mubr.f32.gmra.mrb[10].mxu0 %v26_v50  ;;  %245 = vmatmul.mubr.f32.gmra.mrb[10].mxu1 %v42_v51 }
  0x3c   :  { %419 = vmatprep.mubr.msk.f32.mxu0 %vm66_vm0, %v29_v52  ;;  %427 = vmatprep.mubr.msk.f32.mxu1 %vm66_vm0, %v45_v53 }
  0x3f   :  { %210 = vmatmul.mubr.f32.gmra.mrb[12].mxu0 %v28_v54  ;;  %250 = vmatmul.mubr.f32.gmra.mrb[12].mxu1 %v44_v55 }
  0x40   :  { %420 = vmatprep.mubr.msk.f32.mxu0 %vm66_vm0, %v31_v56  ;;  %428 = vmatprep.mubr.msk.f32.mxu1 %vm66_vm0, %v47_v57 }
  0x43   :  { %215 = vmatmul.mubr.f32.gmra.mrb[14].mxu0 %v30_v58  ;;  %255 = vmatmul.mubr.f32.gmra.mrb[14].mxu1 %v46_v59 }
  0xfa   :  { %v181_v61 = vpop.f32.mrb[0].mxu0  ;;  %v741_v62 = vpop.f32.mrb[0].mxu1 }
  0xfb   :  { %261 = vst.msk [vmem:[%s903_s2] sm:$0xff] %vm260_vm2, %v181_v61  ;;  %v183_v63 = vpop.f32.mrb[1].mxu0  ;;  %269 = vst.msk [vmem:[%s903_s2 + $0x40] sm:$0xff] %vm260_vm2, %v741_v62  ;;  %v223_v0 = vpop.f32.mrb[1].mxu1  ;;  %v326_v1 = vmul.f32 %v181_v61, %v181_v61  ;;  %v285_v4 = vsel %vm260_vm2, %v181_v61, 0.0  ;;  %v334_v60 = vmul.f32 %v741_v62, %v741_v62 }
  0xfd   :  { %v342_v10 = vsel %vm260_vm2, %v326_v1, 0.0 }
  0xfe   :  { %v186_v2 = vpop.f32.mrb[2].mxu0  ;;  %v752_v3 = vpop.f32.mrb[2].mxu1 }
  0xff   :  { %262 = vst.msk [vmem:[%s903_s2 + $0x8] sm:$0xff] %vm260_vm2, %v186_v2  ;;  %v286_v5 = vsel %vm260_vm2, %v186_v2, 0.0  ;;  %v327_v6 = vmul.f32 %v186_v2, %v186_v2  ;;  %v188_v7 = vpop.f32.mrb[3].mxu0  ;;  %270 = vst.msk [vmem:[%s903_s2 + $0x48] sm:$0xff] %vm260_vm2, %v752_v3  ;;  %v228_v8 = vpop.f32.mrb[3].mxu1 }
 0x100   :  { %v287_v9 = vadd.f32 %v286_v5, %v285_v4  ;;  %v300_v4 = vsel %vm260_vm2, %v741_v62, 0.0  ;;  %v335_v5 = vmul.f32 %v752_v3, %v752_v3 }
 0x101   :  { %v343_v11 = vsel %vm260_vm2, %v327_v6, 0.0 }
 0x102   :  { %v344_v12 = vadd.f32 %v343_v11, %v342_v10  ;;  %v191_v13 = vpop.f32.mrb[4].mxu0  ;;  %v767_v14 = vpop.f32.mrb[4].mxu1  ;;  %v302_v10 = vsel %vm260_vm2, %v752_v3, 0.0 }
 0x103   :  { %263 = vst.msk [vmem:[%s903_s2 + $0x10] sm:$0xff] %vm260_vm2, %v191_v13  ;;  %v288_v15 = vsel %vm260_vm2, %v191_v13, 0.0  ;;  %v328_v16 = vmul.f32 %v191_v13, %v191_v13  ;;  %v193_v17 = vpop.f32.mrb[5].mxu0  ;;  %271 = vst.msk [vmem:[%s903_s2 + $0x50] sm:$0xff] %vm260_vm2, %v767_v14  ;;  %v233_v18 = vpop.f32.mrb[5].mxu1  ;;  %v336_v11 = vmul.f32 %v767_v14, %v767_v14  ;;  %v304_v62 = vsel %vm260_vm2, %v767_v14, 0.0 }
 0x104   :  { %v289_v19 = vadd.f32 %v288_v15, %v287_v9  ;;  %v357_v9 = vsel %vm260_vm2, %v334_v60, 0.0  ;;  %v359_v15 = vsel %vm260_vm2, %v335_v5, 0.0 }
 0x105   :  { %v345_v20 = vsel %vm260_vm2, %v328_v16, 0.0 }
 0x106   :  { %v346_v21 = vadd.f32 %v345_v20, %v344_v12  ;;  %v196_v22 = vpop.f32.mrb[6].mxu0  ;;  %v780_v23 = vpop.f32.mrb[6].mxu1 }
 0x107   :  { %264 = vst.msk [vmem:[%s903_s2 + $0x18] sm:$0xff] %vm260_vm2, %v196_v22  ;;  %v290_v24 = vsel %vm260_vm2, %v196_v22, 0.0  ;;  %v329_v25 = vmul.f32 %v196_v22, %v196_v22  ;;  %v198_v26 = vpop.f32.mrb[7].mxu0  ;;  %272 = vst.msk [vmem:[%s903_s2 + $0x58] sm:$0xff] %vm260_vm2, %v780_v23  ;;  %v238_v27 = vpop.f32.mrb[7].mxu1  ;;  %v337_v16 = vmul.f32 %v780_v23, %v780_v23  ;;  %v306_v3 = vsel %vm260_vm2, %v780_v23, 0.0 }
 0x108   :  { %v291_v28 = vadd.f32 %v290_v24, %v289_v19  ;;  %v361_v19 = vsel %vm260_vm2, %v336_v11, 0.0 }
 0x109   :  { %v347_v29 = vsel %vm260_vm2, %v329_v25, 0.0  ;;  %v363_v24 = vsel %vm260_vm2, %v337_v16, 0.0 }
 0x10a   :  { %v348_v30 = vadd.f32 %v347_v29, %v346_v21  ;;  %v201_v31 = vpop.f32.mrb[8].mxu0  ;;  %v793_v32 = vpop.f32.mrb[8].mxu1 }
 0x10b   :  { %265 = vst.msk [vmem:[%s903_s2 + $0x20] sm:$0xff] %vm260_vm2, %v201_v31  ;;  %v292_v33 = vsel %vm260_vm2, %v201_v31, 0.0  ;;  %v330_v34 = vmul.f32 %v201_v31, %v201_v31  ;;  %v203_v35 = vpop.f32.mrb[9].mxu0  ;;  %273 = vst.msk [vmem:[%s903_s2 + $0x60] sm:$0xff] %vm260_vm2, %v793_v32  ;;  %v243_v36 = vpop.f32.mrb[9].mxu1  ;;  %v338_v20 = vmul.f32 %v793_v32, %v793_v32  ;;  %v308_v14 = vsel %vm260_vm2, %v793_v32, 0.0 }
 0x10c   :  { %v293_v37 = vadd.f32 %v292_v33, %v291_v28 }
 0x10d   :  { %v349_v38 = vsel %vm260_vm2, %v330_v34, 0.0  ;;  %v365_v28 = vsel %vm260_vm2, %v338_v20, 0.0 }
 0x10e   :  { %v350_v39 = vadd.f32 %v349_v38, %v348_v30  ;;  %v206_v40 = vpop.f32.mrb[10].mxu0  ;;  %v246_v41 = vpop.f32.mrb[10].mxu1 }
 0x10f   :  { %266 = vst.msk [vmem:[%s903_s2 + $0x28] sm:$0xff] %vm260_vm2, %v206_v40  ;;  %v294_v42 = vsel %vm260_vm2, %v206_v40, 0.0  ;;  %v331_v43 = vmul.f32 %v206_v40, %v206_v40  ;;  %v208_v44 = vpop.f32.mrb[11].mxu0  ;;  %274 = vst.msk [vmem:[%s903_s2 + $0x68] sm:$0xff] %vm260_vm2, %v246_v41  ;;  %v248_v45 = vpop.f32.mrb[11].mxu1  ;;  %v339_v25 = vmul.f32 %v246_v41, %v246_v41  ;;  %v310_v29 = vsel %vm260_vm2, %v246_v41, 0.0 }
 0x110   :  { %v295_v46 = vadd.f32 %v294_v42, %v293_v37 }
 0x111   :  { %v351_v47 = vsel %vm260_vm2, %v331_v43, 0.0  ;;  %v367_v34 = vsel %vm260_vm2, %v339_v25, 0.0 }
 0x112   :  { %v352_v48 = vadd.f32 %v351_v47, %v350_v39  ;;  %v211_v49 = vpop.f32.mrb[12].mxu0  ;;  %v251_v50 = vpop.f32.mrb[12].mxu1 }
 0x113   :  { %267 = vst.msk [vmem:[%s903_s2 + $0x30] sm:$0xff] %vm260_vm2, %v211_v49  ;;  %v296_v51 = vsel %vm260_vm2, %v211_v49, 0.0  ;;  %v332_v52 = vmul.f32 %v211_v49, %v211_v49  ;;  %v213_v53 = vpop.f32.mrb[13].mxu0  ;;  %275 = vst.msk [vmem:[%s903_s2 + $0x70] sm:$0xff] %vm260_vm2, %v251_v50  ;;  %v253_v54 = vpop.f32.mrb[13].mxu1  ;;  %v340_v30 = vmul.f32 %v251_v50, %v251_v50  ;;  %v312_v35 = vsel %vm260_vm2, %v251_v50, 0.0 }
 0x114   :  { %v297_v55 = vadd.f32 %v296_v51, %v295_v46 }
 0x115   :  { %v353_v56 = vsel %vm260_vm2, %v332_v52, 0.0  ;;  %v369_v32 = vsel %vm260_vm2, %v340_v30, 0.0  ;;  %v284_v52 = vld [vmem:[#allocation2] sm:$0x1] }
 0x116   :  { %v354_v57 = vadd.f32 %v353_v56, %v352_v48  ;;  %v216_v58 = vpop.f32.mrb[14].mxu0  ;;  %v256_v59 = vpop.f32.mrb[14].mxu1 }
 0x117   :  { %268 = vst.msk [vmem:[%s903_s2 + $0x38] sm:$0xff] %vm260_vm2, %v216_v58  ;;  %v298_v61 = vsel %vm260_vm2, %v216_v58, 0.0  ;;  %v333_v63 = vmul.f32 %v216_v58, %v216_v58  ;;  %v218_v0 = vpop.f32.mrb[15].mxu0  ;;  %276 = vst.msk [vmem:[%s903_s2 + $0x78] sm:$0xff] %vm260_vm2, %v256_v59  ;;  %v258_v1 = vpop.f32.mrb[15].mxu1  ;;  %v341_v31 = vmul.f32 %v256_v59, %v256_v59  ;;  %v314_v36 = vsel %vm260_vm2, %v256_v59, 0.0 }
 0x118   :  { %v299_v2 = vadd.f32 %v298_v61, %v297_v55  ;;  %s528_s2 = smov [#allocation2]   ;;  %v325_v55 = vld [vmem:[#allocation4] sm:$0x1] }
 0x119   :  { %v355_v6 = vsel %vm260_vm2, %v333_v63, 0.0  ;;  %v371_v39 = vsel %vm260_vm2, %v341_v31, 0.0  ;;  %s389_s11 = sshll.u32 %s528_s2, 4  ;;  %s390_s11 = int_to_ptr.vmem [resolvable:$true] %s389_s11 }
 0x11a   :  { %v301_v7 = vadd.f32 %v300_v4, %v299_v2  ;;  %v356_v8 = vadd.f32 %v355_v6, %v354_v57  ;;  %s478_s14 = scalar_lea.vmem %s390_s11, 16  ;;  %s482_s15 = scalar_lea.vmem %s390_s11, 32 }
 0x11b   :  { %p479_p0 = scmp.ne.s32.totalorder %s390_s11, %s478_s14  ;;  %p483_p1 = scmp.lt.s32.totalorder %s390_s11, %s390_s11 }
 0x11c   :  { %v303_v12 = vadd.f32 %v302_v10, %v301_v7  ;;  %v358_v13 = vadd.f32 %v357_v9, %v356_v8  ;;  %p484_p2 = scmp.lt.s32.totalorder %s482_s15, %s478_s14 }
 0x11e   :  { %v360_v17 = vadd.f32 %v359_v15, %v358_v13  ;;  %v305_v18 = vadd.f32 %v304_v62, %v303_v12  ;;  %p485_p3 = por %p484_p2, %p483_p1 }
 0x120   :  { %v307_v21 = vadd.f32 %v306_v3, %v305_v18  ;;  %v362_v22 = vadd.f32 %v361_v19, %v360_v17  ;;  %p486_p4 = pnand %p485_p3, %p479_p0 }
 0x122   :  { %v309_v26 = vadd.f32 %v308_v14, %v307_v21  ;;  %v364_v27 = vadd.f32 %v363_v24, %v362_v22 }
 0x124   :  { %v366_v23 = vadd.f32 %v365_v28, %v364_v27  ;;  %v311_v33 = vadd.f32 %v310_v29, %v309_v26 }
 0x126   :  { %v368_v37 = vadd.f32 %v367_v34, %v366_v23  ;;  %v313_v38 = vadd.f32 %v312_v35, %v311_v33 }
 0x128   :  { %v370_v40 = vadd.f32 %v369_v32, %v368_v37  ;;  %v315_v42 = vadd.f32 %v314_v36, %v313_v38 }
 0x12a   :  { %v316_v43 = vrot.slane %v315_v42, 4  ;;  %v372_v41 = vadd.f32 %v371_v39, %v370_v40 }
 0x12c   :  { %v317_v44 = vadd.f32 %v316_v43, %v315_v42  ;;  %v373_v45 = vrot.slane %v372_v41, 4 }
 0x12e   :  { %v318_v46 = vrot.slane %v317_v44, 2  ;;  %v374_v47 = vadd.f32 %v373_v45, %v372_v41 }
 0x130   :  { %v319_v48 = vadd.f32 %v318_v46, %v317_v44  ;;  %v375_v49 = vrot.slane %v374_v47, 2 }
 0x132   :  { %v376_v51 = vadd.f32 %v375_v49, %v374_v47  ;;  %v320_v50 = vrot.slane %v319_v48, 1 }
 0x134   :  { %v321_v53 = vadd.f32 %v320_v50, %v319_v48  ;;  %v377_v54 = vrot.slane %v376_v51, 1 }
 0x136   :  { %v322_v56 = vadd.f32 %v321_v53, %v284_v52  ;;  %v378_v57 = vadd.f32 %v377_v54, %v376_v51 }
 0x138   :  { %324 = vst.msk [vmem:[#allocation2] sm:$0x1] %vm281_vm1, %v322_v56  ;;  %v379_v58 = vadd.f32 %v378_v57, %v325_v55 }
 0x139   :  { %489 = shalt.err (!%p486_p4)
}
 0x13a   :  { %s490_s18 = scalar_lea.hbm %s904_s3, 16 }
 0x13b   :  { %p491_p5 = scmp.ne.s32.totalorder %s904_s3, %s490_s18  ;;  %p494_p6 = scmp.lt.u32.totalorder %s490_s18, %s904_s3 }
 0x13d   :  { %p496_p7 = pnand %p494_p6, %p491_p5 }
 0x13f   :  { %499 = shalt.err (!%p496_p7)
}
 0x140   :  { %392 = dma.vmem_to_hbm [thread:$0]  %s390_s11, 16, %s904_s3, [#allocation3]   ;;  %380 = vst.msk [vmem:[#allocation4] sm:$0x1] %vm281_vm1, %v379_v58 }
 0x141   :  { %s500_s25 = scalar_lea.vmem %s868_s13, 16  ;;  %s504_s26 = scalar_lea.vmem %s868_s13, 32 }
 0x142   :  { %p501_p8 = scmp.ne.s32.totalorder %s868_s13, %s500_s25  ;;  %p505_p9 = scmp.lt.s32.totalorder %s868_s13, %s868_s13 }
 0x143   :  { %p506_p10 = scmp.lt.s32.totalorder %s504_s26, %s500_s25 }
 0x145   :  { %p507_p11 = por %p506_p10, %p505_p9 }
 0x147   :  { %p508_p12 = pnand %p507_p11, %p501_p8 }
 0x149   :  { %511 = shalt.err (!%p508_p12)
}
 0x14a   :  { %s512_s29 = scalar_lea.hbm %s905_s4, 16 }
 0x14b   :  { %p513_p13 = scmp.ne.s32.totalorder %s905_s4, %s512_s29  ;;  %p516_p0 = scmp.lt.u32.totalorder %s512_s29, %s905_s4 }
 0x14d   :  { %p518_p1 = pnand %p516_p0, %p513_p13 }
 0x14f   :  { %521 = shalt.err (!%p518_p1)
}
 0x150   :  { %402 = dma.vmem_to_hbm [thread:$0]  %s868_s13, 16, %s905_s4, [#allocation5]  }
 0x151   :  { %522 = dma.done.wait [#allocation3], 16  }
 0x152   :  { %523 = vsyncadd [#allocation3], 4294967280 }
 0x153   :  { %524 = dma.done.wait [#allocation5], 16  }
 0x154   :  { %525 = vsyncadd [#allocation5], 4294967280 }
 0x155   :  { %411 = vsyncpa [#allocation3], 1 }
 0x156   :  { %412 = vsyncpa [#allocation5], 1 }

</bundles_post_ra>
